<compile_context>
chip_gen: v5e
topology: v5e:2x2
jax: 0.10.0
libtpu: 0.0.40
codegen_flags: <defaults>
</compile_context>

<pallas_src>
import jax
import jax.numpy as jnp
from jax.experimental import pallas as pl
from jax.experimental.pallas import tpu as pltpu


# ------------------------------- helpers ------------------------------------


def _round_up(v, m):
    return ((v + m - 1) // m) * m


def _sublane_mult(dtype):
    # Rows per native (sublane, 128) tile: 8 for 4-byte, 16 for 2-byte dtypes.
    return max(8, 32 // jnp.dtype(dtype).itemsize)


def _pad2(a, shape, dtype):
    a = jnp.asarray(a)
    pr, pc = shape[0] - a.shape[0], shape[1] - a.shape[1]
    if pr or pc:
        a = jnp.pad(a, ((0, pr), (0, pc)))
    if a.dtype != jnp.dtype(dtype):
        a = a.astype(dtype)
    return a


def _vmem_budget_bytes():
    try:
        info = pltpu.get_tpu_info()
        phys = int(getattr(info, "vmem_capacity_bytes", 64 * 1024 * 1024))
    except Exception:
        phys = 64 * 1024 * 1024          # conservative (v7x-sized) fallback
    return (phys * 3) // 4               # headroom for Mosaic internal scratch


# ------------------------------- kernels -------------------------------------


def _resnet_block_kernel_shortcut(x_ref, w0_ref, b0_ref, w1_ref, b1_ref,
                                  ws_ref, o_ref):
    """size_in != size_out: shortcut is a bias-free Linear."""
    x = x_ref[...]                                      # native dtype residual
    h0 = jnp.maximum(x, 0.0).astype(w0_ref.dtype)       # actvn(x) -> MXU dtype
    net = jnp.dot(h0, w0_ref[...],
                  preferred_element_type=jnp.float32) + b0_ref[...]
    h1 = jnp.maximum(net, 0.0).astype(w1_ref.dtype)     # actvn(net), f32 relu
    dx = jnp.dot(h1, w1_ref[...],
                 preferred_element_type=jnp.float32) + b1_ref[...]
    x_s = jnp.dot(x.astype(ws_ref.dtype), ws_ref[...],
                  preferred_element_type=jnp.float32)
    o_ref[...] = (x_s + dx).astype(o_ref.dtype)


def _resnet_block_kernel_identity(x_ref, w0_ref, b0_ref, w1_ref, b1_ref,
                                  o_ref):
    """size_in == size_out: shortcut is the identity (kept in f32)."""
    x = x_ref[...]
    h0 = jnp.maximum(x, 0.0).astype(w0_ref.dtype)
    net = jnp.dot(h0, w0_ref[...],
                  preferred_element_type=jnp.float32) + b0_ref[...]
    h1 = jnp.maximum(net, 0.0).astype(w1_ref.dtype)
    dx = jnp.dot(h1, w1_ref[...],
                 preferred_element_type=jnp.float32) + b1_ref[...]
    o_ref[...] = (x.astype(jnp.float32) + dx).astype(o_ref.dtype)


# ------------------------------- wrapper --------------------------------------


def prepare_params(params, *, compute_dtype=jnp.bfloat16):
    """One-time transpose + 128-lane zero-padding of the block's parameters.

    Hoists the per-call weight reshuffle out of the hot path; the returned dict
    can be reused across many resnet_block_fc calls.
    """
    if params.get("_prepared", False):
        return params
    w0 = jnp.asarray(params["w0"])
    b0 = jnp.asarray(params["b0"])
    w1 = jnp.asarray(params["w1"])
    b1 = jnp.asarray(params["b1"])
    ws = params.get("ws")
    size_h, size_in = w0.shape
    size_out = w1.shape[0]
    size_in_p = _round_up(size_in, 128)
    size_h_p = _round_up(size_h, 128)
    size_out_p = _round_up(size_out, 128)
    # Zero-padding weight rows/cols and bias entries leaves the forward pass
    # mathematically unchanged (relu(0)=0, padded channels contribute 0).
    return {
        "_prepared": True,
        "sizes": (size_in, size_h, size_out),
        "padded": (size_in_p, size_h_p, size_out_p),
        "w0": _pad2(w0.T, (size_in_p, size_h_p), compute_dtype),
        "b0": _pad2(b0.reshape(1, -1), (1, size_h_p), jnp.float32),
        "w1": _pad2(w1.T, (size_h_p, size_out_p), compute_dtype),
        "b1": _pad2(b1.reshape(1, -1), (1, size_out_p), jnp.float32),
        "ws": (None if ws is None
               else _pad2(jnp.asarray(ws).T, (size_in_p, size_out_p),
                          compute_dtype)),
    }


def resnet_block_fc(x, params, *, tile_n=512, compute_dtype=jnp.bfloat16,
                    out_dtype=None):
    """Apply the ResnetBlockFC forward pass with a Pallas TPU kernel.

    x:      [N, size_in]  (streamed in its own dtype; only MXU inputs are cast)
    params: raw dict {'w0','b0','w1','b1','ws'} (PyTorch layouts) or the output
            of prepare_params().
    out_dtype: output stream dtype (default: x.dtype); bf16 halves output HBM
            traffic in the mem-bound regime.
    """
    x = jnp.asarray(x)
    N, size_in_x = x.shape
    p = prepare_params(params, compute_dtype=compute_dtype)
    size_in, size_h, size_out = p["sizes"]
    size_in_p, size_h_p, size_out_p = p["padded"]
    assert size_in_x == size_in, "x feature dim does not match params"
    out_dtype = jnp.dtype(x.dtype if out_dtype is None else out_dtype)

    w0, b0, w1, b1, ws = p["w0"], p["b0"], p["w1"], p["b1"], p["ws"]
    has_shortcut = ws is not None

    x_bytes = jnp.dtype(x.dtype).itemsize
    o_bytes = out_dtype.itemsize
    w_bytes = (w0.size * w0.dtype.itemsize + w1.size * w1.dtype.itemsize
               + b0.size * 4 + b1.size * 4)
    if has_shortcut:
        w_bytes += ws.size * ws.dtype.itemsize

    vmem_cap = _vmem_budget_bytes()
    if w_bytes > (3 * vmem_cap) // 4:
        # TODO(synk): K-tiled streaming-weight path for very large hidden sizes.
        raise NotImplementedError(
            f"resident weights ({w_bytes} B) exceed VMEM budget ({vmem_cap} B); "
            "K-tiled path not implemented")

    # ---- batch tiling --------------------------------------------------------
    row_mult = max(_sublane_mult(x.dtype), _sublane_mult(out_dtype))
    tile_n = max(row_mult, _round_up(min(tile_n, N), row_mult))
    if N > row_mult:
        # >= 2 grid steps so the "parallel" batch axis can shard across both
        # TensorCores on v7x (negligible extra grid-step cost on v5e/v6e).
        tile_n = min(tile_n, _round_up(-(-N // 2), row_mult))

    def vmem_needed(tn):
        act = 2 * tn * size_in_p * x_bytes + 2 * tn * size_out_p * o_bytes
        tmp = 4 * tn * (size_in_p + 2 * size_h_p + 2 * size_out_p)  # f32 temps
        return act + tmp + w_bytes

    # Shrink the batch tile instead of letting the compile be rejected / spill.
    while vmem_needed(tile_n) > vmem_cap and tile_n > row_mult:
        tile_n = max(row_mult, _round_up(tile_n // 2, row_mult))

    N_pad = _round_up(N, tile_n)
    grid = (N_pad // tile_n,)
    vmem_limit = int(min(vmem_cap, max(2 * vmem_needed(tile_n),
                                       32 * 1024 * 1024)))

    # ---- operands ------------------------------------------------------------
    x_p = x
    if (N_pad, size_in_p) != x.shape:
        x_p = jnp.pad(x, ((0, N_pad - N), (0, size_in_p - size_in)))

    resident = pl.BlockSpec(memory_space=pltpu.MemorySpace.VMEM)  # single-buffered
    x_spec = pl.BlockSpec((tile_n, size_in_p), lambda i: (i, 0))
    o_spec = pl.BlockSpec((tile_n, size_out_p), lambda i: (i, 0))

    if has_shortcut:
        kernel = _resnet_block_kernel_shortcut
        in_specs = [x_spec] + [resident] * 5
        operands = (x_p, w0, b0, w1, b1, ws)
    else:
        kernel = _resnet_block_kernel_identity
        in_specs = [x_spec] + [resident] * 4
        operands = (x_p, w0, b0, w1, b1)

    flops = 2 * N_pad * (size_in_p * size_h_p + size_h_p * size_out_p)
    if has_shortcut:
        flops += 2 * N_pad * size_in_p * size_out_p
    bytes_accessed = int(N_pad * size_in_p * x_bytes
                         + N_pad * size_out_p * o_bytes + w_bytes)

    out_padded = pl.pallas_call(
        kernel,
        out_shape=jax.ShapeDtypeStruct((N_pad, size_out_p), out_dtype),
        grid_spec=pltpu.PrefetchScalarGridSpec(
            num_scalar_prefetch=0,
            grid=grid,
            in_specs=in_specs,
            out_specs=o_spec,
        ),
        compiler_params=pltpu.CompilerParams(
            dimension_semantics=("parallel",),
            vmem_limit_bytes=vmem_limit,
        ),
        cost_estimate=pl.CostEstimate(
            flops=flops, transcendentals=0, bytes_accessed=bytes_accessed),
    )(*operands)

    if (N_pad, size_out_p) != (N, size_out):
        out_padded = out_padded[:N, :size_out]
    return out_padded


# ------------------------- params + reference ---------------------------------


def init_params(key, size_in, size_out=None, size_h=None, dtype=jnp.float32):
    """Deterministic synthetic parameter init mirroring the module's shapes."""
    if size_out is None:
        size_out = size_in
    if size_h is None:
        size_h = min(size_in, size_out)
    k0, k1, k2, k3 = jax.random.split(key, 4)
    return {
        "w0": jax.random.normal(k0, (size_h, size_in), dtype) * 0.1,
        "b0": jax.random.normal(k1, (size_h,), dtype) * 0.1,
        # fc_1.weight is zero-initialized in the PyTorch module.
        "w1": jnp.zeros((size_out, size_h), dtype),
        "b1": jax.random.normal(k2, (size_out,), dtype) * 0.1,
        "ws": (None if size_in == size_out
               else jax.random.normal(k3, (size_out, size_in), dtype) * 0.1),
    }


def _reference(x, params):
    """Plain-JAX (f32) reference of the PyTorch forward, for a sanity check."""
    relu = lambda v: jnp.maximum(v, 0.0)
    net = relu(x) @ params["w0"].T + params["b0"]
    dx = relu(net) @ params["w1"].T + params["b1"]
    x_s = x if params.get("ws") is None else x @ params["ws"].T
    return x_s + dx


# --------------------------------- demo ----------------------------------------


if __name__ == "__main__":
    key = jax.random.PRNGKey(0)
    kx, kp, kp2, kw, kx2 = jax.random.split(key, 5)

    # Case 1: size_in != size_out -> shortcut Linear path.
    N, size_in, size_out = 16, 32, 48
    x = jax.random.normal(kx, (N, size_in), jnp.float32)
    params = init_params(kp, size_in, size_out)
    # Make fc_1's weight non-zero so the second matmul is actually exercised
    # (the module zero-inits it, which would make dx trivially equal to b1).
    params["w1"] = jax.random.normal(kw, params["w1"].shape, jnp.float32) * 0.1

    ref = _reference(x, params)

    # f32 MXU inputs: tight tolerance against the reference.
    out = jax.block_until_ready(
        resnet_block_fc(x, params, compute_dtype=jnp.float32))
    assert out.shape == (N, size_out)
    assert jnp.allclose(out, ref, atol=1e-5, rtol=1e-5), "f32 shortcut mismatch"

    # bf16 MXU inputs via one-time prepared params (fast path on v6e/v7x).
    prepped = prepare_params(params, compute_dtype=jnp.bfloat16)
    out_bf = jax.block_until_ready(resnet_block_fc(x, prepped))
    assert out_bf.shape == (N, size_out)
    assert jnp.allclose(out_bf, ref, atol=5e-2, rtol=5e-2), "bf16 shortcut mismatch"

    # bf16 output stream option (halves output HBM traffic).
    out_bf16o = jax.block_until_ready(
        resnet_block_fc(x, prepped, out_dtype=jnp.bfloat16))
    assert out_bf16o.dtype == jnp.bfloat16
    assert jnp.allclose(out_bf16o.astype(jnp.float32), ref,
                        atol=5e-2, rtol=5e-2), "bf16 output mismatch"

    # Case 2: size_in == size_out -> identity shortcut, odd batch size
    # (exercises pad-and-slice N handling and the >=2-grid-step split).
    N2 = 13
    x2 = jax.random.normal(kx2, (N2, size_in), jnp.float32)
    params_id = init_params(kp2, size_in)
    ref_id = _reference(x2, params_id)
    out_id = jax.block_until_ready(
        resnet_block_fc(x2, params_id, compute_dtype=jnp.float32))
    assert out_id.shape == (N2, size_in)
    assert jnp.allclose(out_id, ref_id, atol=1e-5, rtol=1e-5), "identity mismatch"

    print("KERNEL_OK")
</pallas_src>

<mosaic_0001>
module attributes {stable_mosaic.version = 11 : i64} {
  func.func @_resnet_block_kernel_shortcut(%arg0: i32, %arg1: memref<8x128xf32, #tpu.memory_space<vmem>>, %arg2: memref<128x128xf32, #tpu.memory_space<vmem>>, %arg3: memref<1x128xf32, #tpu.memory_space<vmem>>, %arg4: memref<128x128xf32, #tpu.memory_space<vmem>>, %arg5: memref<1x128xf32, #tpu.memory_space<vmem>>, %arg6: memref<128x128xf32, #tpu.memory_space<vmem>>, %arg7: memref<8x128xf32, #tpu.memory_space<vmem>>) attributes {dimension_semantics = [#tpu.dimension_semantics<parallel>], iteration_bounds = array<i64: 2>, scalar_prefetch = 0 : i64, scratch_operands = 0 : i64, tpu.core_type = #tpu.core_type<tc>, window_params = [{transform_indices = @transform_0, window_bounds = array<i64: 8, 128>}, {pipeline_mode = #tpu.pipeline_mode<synchronous>, transform_indices = @transform_1, window_bounds = array<i64: 128, 128>}, {pipeline_mode = #tpu.pipeline_mode<synchronous>, transform_indices = @transform_2, window_bounds = array<i64: 1, 128>}, {pipeline_mode = #tpu.pipeline_mode<synchronous>, transform_indices = @transform_3, window_bounds = array<i64: 128, 128>}, {pipeline_mode = #tpu.pipeline_mode<synchronous>, transform_indices = @transform_4, window_bounds = array<i64: 1, 128>}, {pipeline_mode = #tpu.pipeline_mode<synchronous>, transform_indices = @transform_5, window_bounds = array<i64: 128, 128>}, {transform_indices = @transform_6, window_bounds = array<i64: 8, 128>}]} {
    %c0 = arith.constant 0 : index
    %c0_0 = arith.constant 0 : index
    %0 = vector.load %arg1[%c0, %c0_0] : memref<8x128xf32, #tpu.memory_space<vmem>>, vector<8x128xf32>
    %cst = arith.constant 0.000000e+00 : f32
    %1 = vector.broadcast %cst : f32 to vector<8x128xf32>
    %2 = arith.maximumf %0, %1 : vector<8x128xf32>
    %c0_1 = arith.constant 0 : index
    %c0_2 = arith.constant 0 : index
    %3 = vector.load %arg2[%c0_1, %c0_2] : memref<128x128xf32, #tpu.memory_space<vmem>>, vector<128x128xf32>
    %cst_3 = arith.constant dense<0.000000e+00> : vector<8x128xf32>
    %4 = tpu.matmul %2, %3, %cst_3 {dimension_numbers = #tpu.dot_dimension_numbers<[1], [0], [0], [1], [0, 0, 1, 1], [], []>} : vector<8x128xf32>, vector<128x128xf32>, vector<8x128xf32> -> vector<8x128xf32>
    %c0_4 = arith.constant 0 : index
    %c0_5 = arith.constant 0 : index
    %5 = vector.load %arg3[%c0_4, %c0_5] : memref<1x128xf32, #tpu.memory_space<vmem>>, vector<1x128xf32>
    %6 = vector.broadcast %5 : vector<1x128xf32> to vector<8x128xf32>
    %7 = arith.addf %4, %6 : vector<8x128xf32>
    %cst_6 = arith.constant 0.000000e+00 : f32
    %8 = vector.broadcast %cst_6 : f32 to vector<8x128xf32>
    %9 = arith.maximumf %7, %8 : vector<8x128xf32>
    %c0_7 = arith.constant 0 : index
    %c0_8 = arith.constant 0 : index
    %10 = vector.load %arg4[%c0_7, %c0_8] : memref<128x128xf32, #tpu.memory_space<vmem>>, vector<128x128xf32>
    %cst_9 = arith.constant dense<0.000000e+00> : vector<8x128xf32>
    %11 = tpu.matmul %9, %10, %cst_9 {dimension_numbers = #tpu.dot_dimension_numbers<[1], [0], [0], [1], [0, 0, 1, 1], [], []>} : vector<8x128xf32>, vector<128x128xf32>, vector<8x128xf32> -> vector<8x128xf32>
    %c0_10 = arith.constant 0 : index
    %c0_11 = arith.constant 0 : index
    %12 = vector.load %arg5[%c0_10, %c0_11] : memref<1x128xf32, #tpu.memory_space<vmem>>, vector<1x128xf32>
    %13 = vector.broadcast %12 : vector<1x128xf32> to vector<8x128xf32>
    %14 = arith.addf %11, %13 : vector<8x128xf32>
    %c0_12 = arith.constant 0 : index
    %c0_13 = arith.constant 0 : index
    %15 = vector.load %arg6[%c0_12, %c0_13] : memref<128x128xf32, #tpu.memory_space<vmem>>, vector<128x128xf32>
    %cst_14 = arith.constant dense<0.000000e+00> : vector<8x128xf32>
    %16 = tpu.matmul %0, %15, %cst_14 {dimension_numbers = #tpu.dot_dimension_numbers<[1], [0], [0], [1], [0, 0, 1, 1], [], []>} : vector<8x128xf32>, vector<128x128xf32>, vector<8x128xf32> -> vector<8x128xf32>
    %17 = arith.addf %16, %14 : vector<8x128xf32>
    %c0_15 = arith.constant 0 : index
    %c0_16 = arith.constant 0 : index
    %18 = vector.load %arg7[%c0_15, %c0_16] : memref<8x128xf32, #tpu.memory_space<vmem>>, vector<8x128xf32>
    tpu.vector_store %arg7[%c0_15, %c0_16], %17 {strides = array<i32>} : memref<8x128xf32, #tpu.memory_space<vmem>>, vector<8x128xf32>,
    return
  }
  func.func @transform_0(%arg0: i32) -> (i32, i32) {
    %c0_i32 = arith.constant 0 : i32
    %c0_i32_0 = arith.constant 0 : i32
    return %arg0, %c0_i32 : i32, i32
  }
  func.func @transform_1(%arg0: i32) -> (i32, i32) {
    %c0_i32 = arith.constant 0 : i32
    %c0_i32_0 = arith.constant 0 : i32
    %c0_i32_1 = arith.constant 0 : i32
    return %c0_i32, %c0_i32_0 : i32, i32
  }
  func.func @transform_2(%arg0: i32) -> (i32, i32) {
    %c0_i32 = arith.constant 0 : i32
    %c0_i32_0 = arith.constant 0 : i32
    %c0_i32_1 = arith.constant 0 : i32
    return %c0_i32, %c0_i32_0 : i32, i32
  }
  func.func @transform_3(%arg0: i32) -> (i32, i32) {
    %c0_i32 = arith.constant 0 : i32
    %c0_i32_0 = arith.constant 0 : i32
    %c0_i32_1 = arith.constant 0 : i32
    return %c0_i32, %c0_i32_0 : i32, i32
  }
  func.func @transform_4(%arg0: i32) -> (i32, i32) {
    %c0_i32 = arith.constant 0 : i32
    %c0_i32_0 = arith.constant 0 : i32
    %c0_i32_1 = arith.constant 0 : i32
    return %c0_i32, %c0_i32_0 : i32, i32
  }
  func.func @transform_5(%arg0: i32) -> (i32, i32) {
    %c0_i32 = arith.constant 0 : i32
    %c0_i32_0 = arith.constant 0 : i32
    %c0_i32_1 = arith.constant 0 : i32
    return %c0_i32, %c0_i32_0 : i32, i32
  }
  func.func @transform_6(%arg0: i32) -> (i32, i32) {
    %c0_i32 = arith.constant 0 : i32
    %c0_i32_0 = arith.constant 0 : i32
    return %arg0, %c0_i32 : i32, i32
  }
}

</mosaic_0001>

<bundles_post_ra>
// kernel: tpu_custom_call.1
= control target key start
LH: loop header
LB: loop body
LE: loop exit
PB: predicated region body
PF: predicated region fallthrough
CT: control target
= control target key end

     0   :  { %11 = vsyncpa [#allocation3], 0  ;;  %s1058_s0 = inlined_call_operand.hbm [shape: f32[16,128], index: 0, kind: input, shape index: {}]   ;;  %s1059_s1 = inlined_call_operand.hbm [shape: f32[128,128], index: 1, kind: input, shape index: {}]   ;;  %s1060_s2 = inlined_call_operand.vmem [shape: f32[1,128], index: 2, kind: input, shape index: {}]   ;;  %s1061_s3 = inlined_call_operand.hbm [shape: f32[128,128], index: 3, kind: input, shape index: {}]   ;;  %s1062_s4 = inlined_call_operand.vmem [shape: f32[1,128], index: 4, kind: input, shape index: {}]   ;;  %s1063_s5 = inlined_call_operand.hbm [shape: f32[128,128], index: 5, kind: input, shape index: {}]   ;;  %s1064_s6 = inlined_call_operand.hbm [shape: f32[16,128], index: 6, kind: output, shape index: {}]  }
   0x1   :  { %13 = vsyncpa [#allocation3 + $0x1], 0 }
   0x2   :  { %14 = vsyncpa [#allocation6], 0 }
   0x3   :  { %15 = vsyncpa [#allocation9], 0 }
   0x4   :  { %16 = vsyncpa [#allocation4], 0 }
   0x5   :  { %18 = vsyncpa [#allocation4 + $0x1], 0  ;;  %s889_s21 = smov 0   ;;  %s891_s22 = smov 0  }
   0x6   :  { %s893_s23 = smov 0   ;;  %s895_s24 = smov 0  }
   0x7 LB: > { %s197_s27 = sshll.u32 %s1059_s1, 4  ;;  %s913_s28 = sadd.s32 4294967295, %s847_s24   ;;  %s847_s24 = sphi %s895_s24, %s1075_s24   ;;  %s843_s23 = sphi %s893_s23, %s1074_s23   ;;  %s839_s22 = sphi %s891_s22, %s1073_s22   ;;  %s835_s21 = sphi %s889_s21, %s1072_s21   ;;  %s198_s27 = int_to_ptr.hbm [resolvable:$true] %s197_s27 }
   0x8   : > { %p555_p0 = scmp.ge.s32.totalorder %s847_s24, 1  ;;  %p45_p1 = scmp.eq.s32.totalorder %s913_s28, 0 }
   0x9   : > { %p186_p2 = scmp.lt.s32.totalorder %s847_s24, 3  ;;  %s849_s30 = smov [#allocation5]  }
   0xa   : > { %s199_s7 = sshll.u32 %s849_s30, 4  ;;  %s214_s10 = sshll.u32 %s1061_s3, 4  ;;  %s200_s7 = int_to_ptr.vmem [resolvable:$true] %s199_s7  ;;  %s215_s10 = int_to_ptr.hbm [resolvable:$true] %s214_s10 }
   0xb   : > { %p918_p3 = pnand %p555_p0, %p186_p2  ;;  %s231_s14 = sshll.u32 %s1063_s5, 4  ;;  %s232_s14 = int_to_ptr.hbm [resolvable:$true] %s231_s14 }
   0xc   : > { %s850_s15 = smov [#allocation7]   ;;  %s851_s17 = smov 128  }
   0xd   : > { %p588_p4 = pneg %p918_p3  ;;  %s216_s16 = sshll.u32 %s850_s15, 4  ;;  %s217_s16 = int_to_ptr.vmem [resolvable:$true] %s216_s16 }
   0xe   : > { %s852_s18 = smov 8   ;;  %s853_s19 = smov [#allocation8]  }
   0xf   : > { %p930_p6 = pnand %p588_p4, %p45_p1  ;;  %s233_s20 = sshll.u32 %s853_s19, 4  ;;  %s234_s20 = int_to_ptr.vmem [resolvable:$true] %s233_s20 }
  0x10   : > { %s554_s25 = sadd.s32 4294967294, %s847_s24   ;;  %s945_s26 = sadd.s32 1, %s847_s24  }
  0x11   : > { %591 = dma.hbm_to_vmem [thread:$0]  (!%p930_p6), %s198_s27, 2048, %s200_s7, [#allocation6], %s851_s17, %s851_s17, %s852_s18  }
  0x12   : > { %594 = dma.hbm_to_vmem [thread:$0]  (!%p930_p6), %s215_s10, 2048, %s217_s16, [#allocation6], %s851_s17, %s851_s17, %s852_s18  }
  0x13   : > { %597 = dma.hbm_to_vmem [thread:$0]  (!%p930_p6), %s232_s14, 2048, %s234_s20, [#allocation9], %s851_s17, %s851_s17, %s852_s18  }
  0x14   : > { %s31_s30 = sadd.s32 1, %s843_s23  ;;  %s28_s27 = ssub.s32 %s847_s24, %s945_s26 }
  0x15   : > { %p38_p7 = scmp.ne.s32.totalorder %s843_s23, %s839_s22  ;;  %p29_p8 = scmp.eq.s32.totalorder %s28_s27, 0 }
  0x16   : > { %p39_p9 = scmp.eq.s32.totalorder %s847_s24, 0  ;;  %p44_p10 = scmp.ne.s32.totalorder %s839_s22, %s835_s21 }
  0x17   : > { %p173_p11 = scmp.eq.s32.totalorder %s913_s28, 1  ;;  %p179_p0 = scmp.eq.s32.totalorder %s554_s25, 1 }
  0x18   : > { %s957_s7 = scalar_select %p29_p8, %s843_s23, %s31_s30  }
  0x19   : > { %p961_p12 = por %p45_p1, %p44_p10  ;;  %p965_p13 = por %p173_p11, %p38_p7 }
  0x1a   : > { %p40_p2 = por %p39_p9, %p38_p7  ;;  %s247_s10 = sand.u32 1, %s843_s23  }
  0x1b   : > { %p970_p4 = por %p179_p0, %p44_p10  ;;  %p609_p6 = scmp.lt.s32.totalorder %s847_s24, 2 }
  0x1c   : > { %s560_s12 = sshll.u32 %s247_s10, 3  ;;  %s561_s13 = sshll.u32 %s847_s24, 3 }
  0x1d   : > { %s255_s16 = scalar_lea.hbm %s1058_s0, %s561_s13  ;;  %s251_s18 = scalar_lea.vmem [#allocation2], %s560_s12 }
  0x1e   : > { %s257_s17 = sshll.u32 %s255_s16, 4  ;;  %s259_s19 = sshll.u32 %s251_s18, 4  ;;  %s258_s17 = int_to_ptr.hbm [resolvable:$true] %s257_s17  ;;  %s260_s19 = int_to_ptr.vmem [resolvable:$true] %s259_s19 }
  0x1f   : > { %p979_p8 = pnand %p609_p6, %p40_p2  ;;  %s248_s25 = scalar_lea.sflag [#allocation3], %s247_s10 }
  0x20   : > { %s743_s30 = sshra.s32 %s258_s17, 4  ;;  %s750_s12 = scalar_lea.hbm %s1058_s0, 16  ;;  %s744_s30 = int_to_ptr.hbm [resolvable:$true] %s743_s30 }
  0x21   : > { %s745_s27 = scalar_lea.hbm %s744_s30, 8  ;;  %p747_p9 = pneg %p979_p8 }
  0x22   : > { %p746_p7 = scmp.ne.s32.totalorder %s744_s30, %s745_s27  ;;  %p751_p0 = scmp.lt.s32.totalorder %s744_s30, %s1058_s0 }
  0x23   : > { %p752_p2 = scmp.lt.s32.totalorder %s750_s12, %s745_s27 }
  0x24   : > { %p748_p10 = pnand %p747_p9, %p746_p7 }
  0x25   : > { %p753_p6 = por %p752_p2, %p751_p0 }
  0x26   : > { %p749_p11 = pneg %p748_p10 }
  0x28   : > { %p754_p5 = pnand %p753_p6, %p749_p11 }
  0x2a   : > { %757 = shalt.err (!%p754_p5)
}
  0x2b   : > { %601 = dma.hbm_to_vmem [thread:$0]  (!%p979_p8), %s258_s17, 128, %s260_s19, %s248_s25  }
  0x2c   : > { %268 = sbr.rel (%p918_p3) target bundleno = 349 (0x15d), region = 44  ;;  %s996_s10 = sand.u32 (!%p918_p3), 1, %s839_s22  }
  0x2d   : > { %s563_s18 = sshll.u32 (!%p918_p3), %s996_s10, 3  ;;  %s271_s13 = scalar_lea.sflag (!%p918_p3), [#allocation3], %s996_s10 }
  0x2e   : > { %s1002_s30 = scalar_lea.vmem (!%p918_p3), [#allocation2], %s563_s18 }
  0x31   : > { %818 = dma.done.wait (%p961_p12), %s271_s13, 128  }
  0x32   : > { %820 = vsyncadd (%p961_p12), %s271_s13, 4294967168 }
  0x33   : > { %822 = dma.done.wait (%p45_p1), [#allocation6], 4096  }
  0x34   : > { %824 = vsyncadd (%p45_p1), [#allocation6], 4294963200 }
  0x35   : > { %826 = dma.done.wait (%p45_p1), [#allocation9], 2048  }
  0x36   : > { %828 = vsyncadd (%p45_p1), [#allocation9], 4294965248  ;;  %v336_v0 = vld [vmem:[#allocation5 + $0x78] sm:$0xff]  ;;  %v335_v1 = vld [vmem:[#allocation5 + $0x70] sm:$0xff]  ;;  %s569_s17 = sshll.u32 %s913_s28, 3  ;;  %s318_s12 = scalar_lea.vmem [#allocation10], %s563_s18 }
  0x37   : > { %341 = vmatpush.msra.mxu0 %v336_v0  ;;  %v334_v2 = vld [vmem:[#allocation5 + $0x68] sm:$0xff]  ;;  %v333_v3 = vld [vmem:[#allocation5 + $0x60] sm:$0xff]  ;;  %v417_v4 = vld [vmem:[#allocation8 + $0x78] sm:$0xff]  ;;  %s450_s14 = scalar_lea.hbm %s1064_s6, %s569_s17  ;;  %s452_s15 = sshll.u32 %s318_s12, 4  ;;  %s453_s15 = int_to_ptr.vmem [resolvable:$true] %s452_s15 }
  0x38   : > { %v332_v5 = vld [vmem:[#allocation5 + $0x58] sm:$0xff]  ;;  %418 = vmatpush.msra.mxu2 %v417_v4  ;;  %v416_v6 = vld [vmem:[#allocation8 + $0x70] sm:$0xff]  ;;  %v415_v8 = vld [vmem:[#allocation8 + $0x68] sm:$0xff]  ;;  %s454_s16 = sshll.u32 %s450_s14, 4  ;;  %s440_s28 = scalar_lea.sflag [#allocation4], %s996_s10  ;;  %s455_s16 = int_to_ptr.hbm [resolvable:$true] %s454_s16 }
  0x39   : > { %342 = vmatpush.msra.mxu0 %v335_v1  ;;  %v377_v7 = vld [vmem:[#allocation7 + $0x78] sm:$0xff]  ;;  %v376_v9 = vld [vmem:[#allocation7 + $0x70] sm:$0xff]  ;;  %v375_v11 = vld [vmem:[#allocation7 + $0x68] sm:$0xff]  ;;  %s787_s13 = sshra.s32 %s455_s16, 4  ;;  %s793_s17 = scalar_lea.hbm %s1064_s6, 16  ;;  %s788_s13 = int_to_ptr.hbm [resolvable:$true] %s787_s13 }
  0x3a   : > { %382 = vmatpush.msra.mxu1 %v377_v7  ;;  %v331_v10 = vld [vmem:[#allocation5 + $0x50] sm:$0xff]  ;;  %419 = vmatpush.msra.mxu2 %v416_v6  ;;  %v414_v12 = vld [vmem:[#allocation8 + $0x60] sm:$0xff]  ;;  %v330_v13 = vld [vmem:[#allocation5 + $0x48] sm:$0xff]  ;;  %p794_p12 = scmp.lt.s32.totalorder %s788_s13, %s1064_s6 }
  0x3b   : > { %343 = vmatpush.msra.mxu0 %v334_v2  ;;  %v374_v14 = vld [vmem:[#allocation7 + $0x60] sm:$0xff]  ;;  %v413_v15 = vld [vmem:[#allocation8 + $0x58] sm:$0xff]  ;;  %v412_v18 = vld [vmem:[#allocation8 + $0x50] sm:$0xff] }
  0x3c   : > { %383 = vmatpush.msra.mxu1 %v376_v9  ;;  %420 = vmatpush.msra.mxu2 %v415_v8  ;;  %v329_v16 = vld [vmem:[#allocation5 + $0x40] sm:$0xff]  ;;  %v373_v17 = vld [vmem:[#allocation7 + $0x58] sm:$0xff]  ;;  %v372_v20 = vld [vmem:[#allocation7 + $0x50] sm:$0xff] }
  0x3d   : > { %344 = vmatpush.msra.mxu0 %v333_v3  ;;  %v328_v19 = vld [vmem:[#allocation5 + $0x38] sm:$0xff]  ;;  %v411_v21 = vld [vmem:[#allocation8 + $0x48] sm:$0xff]  ;;  %v327_v22 = vld [vmem:[#allocation5 + $0x30] sm:$0xff] }
  0x3e   : > { %384 = vmatpush.msra.mxu1 %v375_v11  ;;  %421 = vmatpush.msra.mxu2 %v414_v12  ;;  %v371_v23 = vld [vmem:[#allocation7 + $0x48] sm:$0xff]  ;;  %v410_v24 = vld [vmem:[#allocation8 + $0x40] sm:$0xff]  ;;  %v409_v27 = vld [vmem:[#allocation8 + $0x38] sm:$0xff] }
  0x3f   : > { %345 = vmatpush.msra.mxu0 %v332_v5  ;;  %v326_v25 = vld [vmem:[#allocation5 + $0x28] sm:$0xff]  ;;  %v370_v26 = vld [vmem:[#allocation7 + $0x40] sm:$0xff]  ;;  %v369_v29 = vld [vmem:[#allocation7 + $0x38] sm:$0xff] }
  0x40   : > { %385 = vmatpush.msra.mxu1 %v374_v14  ;;  %422 = vmatpush.msra.mxu2 %v413_v15  ;;  %v325_v28 = vld [vmem:[#allocation5 + $0x20] sm:$0xff]  ;;  %v408_v30 = vld [vmem:[#allocation8 + $0x30] sm:$0xff]  ;;  %v324_v31 = vld [vmem:[#allocation5 + $0x18] sm:$0xff] }
  0x41   : > { %346 = vmatpush.msra.mxu0 %v331_v10  ;;  %v368_v32 = vld [vmem:[#allocation7 + $0x30] sm:$0xff]  ;;  %v407_v33 = vld [vmem:[#allocation8 + $0x28] sm:$0xff]  ;;  %v406_v37 = vld [vmem:[#allocation8 + $0x20] sm:$0xff] }
  0x42   : > { %386 = vmatpush.msra.mxu1 %v373_v17  ;;  %423 = vmatpush.msra.mxu2 %v412_v18  ;;  %v323_v34 = vld [vmem:[#allocation5 + $0x10] sm:$0xff]  ;;  %v367_v35 = vld [vmem:[#allocation7 + $0x28] sm:$0xff]  ;;  %v366_v39 = vld [vmem:[#allocation7 + $0x20] sm:$0xff] }
  0x43   : > { %347 = vmatpush.msra.mxu0 %v330_v13  ;;  %v319_v36 = vld [vmem:[%s1002_s30] sm:$0xff]  ;;  %v322_v38 = vld [vmem:[#allocation5 + $0x8] sm:$0xff]  ;;  %v321_v41 = vld [vmem:[#allocation5] sm:$0xff]  ;;  %s789_s30 = scalar_lea.hbm %s788_s13, 8 }
  0x44   : > { %387 = vmatpush.msra.mxu1 %v372_v20  ;;  %424 = vmatpush.msra.mxu2 %v411_v21  ;;  %v405_v40 = vld [vmem:[#allocation8 + $0x18] sm:$0xff]  ;;  %v320_v42 = vmax.f32 %v319_v36, 0.0  ;;  %v404_v44 = vld [vmem:[#allocation8 + $0x10] sm:$0xff]  ;;  %v403_v45 = vld [vmem:[#allocation8 + $0x8] sm:$0xff]  ;;  %p790_p1 = scmp.ne.s32.totalorder %s788_s13, %s789_s30  ;;  %p795_p8 = scmp.lt.s32.totalorder %s793_s17, %s789_s30 }
  0x45   : > { %348 = vmatpush.msra.mxu0 %v329_v16  ;;  %v365_v43 = vld [vmem:[#allocation7 + $0x18] sm:$0xff]  ;;  %v364_v46 = vld [vmem:[#allocation7 + $0x10] sm:$0xff]  ;;  %v402_v47 = vld [vmem:[#allocation8] sm:$0xff] }
  0x46   : > { %388 = vmatpush.msra.mxu1 %v371_v23  ;;  %425 = vmatpush.msra.mxu2 %v410_v24  ;;  %v363_v48 = vld [vmem:[#allocation7 + $0x8] sm:$0xff]  ;;  %v362_v49 = vld [vmem:[#allocation7] sm:$0xff]  ;;  %v651_v50 = vld [vmem:[%s1060_s2] ss:$0 sm:$0xff]  ;;  %p791_p3 = pnand %p790_p1, %p965_p13  ;;  %p796_p7 = por %p795_p8, %p794_p12 }
  0x47   : > { %349 = vmatpush.msra.mxu0 %v328_v19  ;;  %v652_v54 = vld [vmem:[%s1062_s4] ss:$0 sm:$0xff] }
  0x48   : > { %389 = vmatpush.msra.mxu1 %v370_v26  ;;  %426 = vmatpush.msra.mxu2 %v409_v27  ;;  %p792_p5 = pneg %p791_p3 }
  0x49   : > { %350 = vmatpush.msra.mxu0 %v327_v22 }
  0x4a   : > { %390 = vmatpush.msra.mxu1 %v369_v29  ;;  %427 = vmatpush.msra.mxu2 %v408_v30  ;;  %p797_p9 = pnand %p796_p7, %p792_p5 }
  0x4b   : > { %351 = vmatpush.msra.mxu0 %v326_v25 }
  0x4c   : > { %391 = vmatpush.msra.mxu1 %v368_v32  ;;  %428 = vmatpush.msra.mxu2 %v407_v33 }
  0x4d   : > { %352 = vmatpush.msra.mxu0 %v325_v28 }
  0x4e   : > { %392 = vmatpush.msra.mxu1 %v367_v35  ;;  %429 = vmatpush.msra.mxu2 %v406_v37 }
  0x4f   : > { %353 = vmatpush.msra.mxu0 %v324_v31 }
  0x50   : > { %393 = vmatpush.msra.mxu1 %v366_v39  ;;  %430 = vmatpush.msra.mxu2 %v405_v40 }
  0x51   : > { %354 = vmatpush.msra.mxu0 %v323_v34 }
  0x52   : > { %394 = vmatpush.msra.mxu1 %v365_v43  ;;  %431 = vmatpush.msra.mxu2 %v404_v44 }
  0x53   : > { %355 = vmatpush.msra.mxu0 %v322_v38 }
  0x54   : > { %432 = vmatpush.msra.mxu2 %v403_v45  ;;  %395 = vmatpush.msra.mxu1 %v364_v46 }
  0x55   : > { %356 = vmatpush.msra.mxu0 %v321_v41 }
  0x56   : > { %357 = vmatmul.f32.vlgmr.msra.gmra.mxu0 %v320_v42  ;;  %433 = vmatpush.msra.mxu2 %v402_v47 }
  0x57   : > { %434 = vmatmul.f32.vlgmr.msra.gmra.mxu2 %v319_v36  ;;  %396 = vmatpush.msra.mxu1 %v363_v48 }
  0x59   : > { %397 = vmatpush.msra.mxu1 %v362_v49 }
  0xd3   : > { %v358_v51 = vpop.f32.mrf.mxu0 }
  0xd4   : > { %v359_v52 = vadd.f32 %v651_v50, %v358_v51 }
  0xd6   : > { %v361_v53 = vmax.f32 %v359_v52, 0.0 }
  0xd8   : > { %398 = vmatmul.f32.vlgmr.msra.gmra.mxu1 %v361_v53 }
  0xda   : > { %v435_v56 = vpop.f32.mrf.mxu2 }
 0x155   : > { %v399_v55 = vpop.f32.mrf.mxu1 }
 0x156   : > { %v400_v57 = vadd.f32 %v652_v54, %v399_v55 }
 0x158   : > { %v436_v58 = vadd.f32 %v435_v56, %v400_v57 }
 0x15a   : > { %438 = vst [vmem:[%s318_s12] sm:$0xff] %v436_v58 }
 0x15b   : > { %800 = shalt.err (!%p797_p9)
}
 0x15c   : > { %586 = dma.vmem_to_hbm [thread:$0]  (%p965_p13), %s453_s15, 128, %s455_s16, %s440_s28  }
 0x15d PF: > { %s466_s10 = sand.u32 1, %s835_s21   ;;  %p1071_p10 = scmp.ge.s32.totalorder %s847_s24, 2 }
 0x15e   : > { %s467_s20 = scalar_lea.sflag [#allocation4], %s466_s10 }
 0x15f   : > { %p603_p11 = pnand %p1071_p10, %p970_p4 }
 0x161   : > { %p604_p0 = pneg %p603_p11 }
 0x163   : > { %830 = dma.done.wait (%p604_p0), %s467_s20, 128  }
 0x164   : > { %832 = vsyncadd (%p604_p0), %s467_s20, 4294967168  ;;  %p21_p2 = scmp.ge.s32.totalorder %s945_s26, 4   ;;  %s1072_s21 = smov %s839_s22 }
 0x165   : > { %s1073_s22 = smov %s843_s23  ;;  %s1074_s23 = smov %s957_s7 }
 0x166   : > { %s1075_s24 = smov %s945_s26  ;;  %23 = sbr.rel (!%p21_p2) target bundleno = 7 (0x7), region = 101 }
 0x16b   :  { %473 = vsyncpa [#allocation3], 1 }
 0x16c   :  { %475 = vsyncpa [#allocation3 + $0x1], 1 }
 0x16d   :  { %476 = vsyncpa [#allocation6], 1 }
 0x16e   :  { %477 = vsyncpa [#allocation9], 1 }
 0x16f   :  { %478 = vsyncpa [#allocation4], 1 }
 0x170   :  { %480 = vsyncpa [#allocation4 + $0x1], 1 }

</bundles_post_ra>
